<compile_context>
chip_gen: v7x
topology: tpu7x:2x2x1
jax: 0.10.0
libtpu: 0.0.40
codegen_flags: <defaults>
</compile_context>

<pallas_src>
import jax
import jax.numpy as jnp
from jax.experimental import pallas as pl
from jax.experimental.pallas import tpu as pltpu

IN_DIM = 32 * 32 * 3   # 3072
HID = 64
OUT = 10
HID_PAD = 128          # pad hidden width to a full 128-lane vreg / MXU tile
OUT_PAD = 128          # lane-dense output (multiple of 128) -> unmasked stores
NEG_BIG = -1e30        # bias fill for padded logit columns (exp underflows to 0)


def mlp_kernel(x_ref,
               w1_ref, b1_ref,
               w2_ref, b2_ref,
               w3_ref, b3_ref,
               w4_ref, b4_ref,
               o_ref):
    # x arrives as f32 from HBM; cast to bf16 here (VPU slack is huge) so the
    # wrapper never needs a separate HBM cast pass.
    x = x_ref[...].astype(jnp.bfloat16)                               # (TB, 3072)

    h = jnp.dot(x, w1_ref[...], preferred_element_type=jnp.float32) + b1_ref[...]
    h = jnp.maximum(h, 0.0).astype(jnp.bfloat16)

    h = jnp.dot(h, w2_ref[...], preferred_element_type=jnp.float32) + b2_ref[...]
    h = jnp.maximum(h, 0.0).astype(jnp.bfloat16)

    h = jnp.dot(h, w3_ref[...], preferred_element_type=jnp.float32) + b3_ref[...]
    h = jnp.maximum(h, 0.0).astype(jnp.bfloat16)

    logits = jnp.dot(h, w4_ref[...], preferred_element_type=jnp.float32) + b4_ref[...]
    # Columns >= OUT carry a -1e30 bias: they never win the row max and exp() -> 0,
    # so the denominator equals the 10-class one exactly.

    m = jnp.max(logits, axis=1, keepdims=True)
    e = jnp.exp(logits - m)
    denom = jnp.sum(e, axis=1, keepdims=True)
    o_ref[...] = (e / denom).astype(o_ref.dtype)   # exact normalization (free here)


def _pad2(a, shape, fill=0.0):
    """Embed 2-D array `a` in the top-left corner of a `shape`-sized array."""
    out = jnp.full(shape, fill, dtype=a.dtype)
    return out.at[: a.shape[0], : a.shape[1]].set(a)


def _choose_batch_tile(B, tb_max):
    """Pick a batch tile that (a) is sublane/lane friendly, (b) keeps >= 4 grid
    steps when the batch allows it (v7x megacore split + per-core pipelining),
    and (c) divides B when possible so the wrapper never has to jnp.pad x."""
    if B <= 16:
        return ((B + 7) // 8) * 8                      # single small step
    quarter = ((B + 3) // 4 + 15) // 16 * 16           # >= 4 grid steps
    t = max(16, min((tb_max // 16) * 16, quarter))
    for cand in range(t, 15, -16):                     # prefer an exact divisor
        if B % cand == 0:
            return cand
    return t                                           # rare: pad the ragged tail


def mlp_forward(x, params, *, tb=512):
    """x: (B, 3, 32, 32) float32 (NCHW, like PyTorch). Returns (B, 10) softmax probs.

    tb: requested max batch tile. 512 is a good default everywhere; 1024 is worth
    it on v7x (3.2 TB/s HBM) for very large batches."""
    B = x.shape[0]
    x2 = x.reshape(B, IN_DIM)                 # same view as torch .view(-1, 3072); stays f32

    (w1, b1), (w2, b2), (w3, b3), (w4, b4) = params

    # Pad weights to lane-dense, MXU-friendly shapes. Zero-padded hidden units stay
    # zero through ReLU; padded output columns are masked via a -1e30 bias.
    w1p = _pad2(w1, (IN_DIM, HID_PAD)).astype(jnp.bfloat16)
    w2p = _pad2(w2, (HID_PAD, HID_PAD)).astype(jnp.bfloat16)
    w3p = _pad2(w3, (HID_PAD, HID_PAD)).astype(jnp.bfloat16)
    w4p = _pad2(w4, (HID_PAD, OUT_PAD)).astype(jnp.bfloat16)
    b1p = _pad2(b1, (1, HID_PAD)).astype(jnp.float32)
    b2p = _pad2(b2, (1, HID_PAD)).astype(jnp.float32)
    b3p = _pad2(b3, (1, HID_PAD)).astype(jnp.float32)
    b4p = _pad2(b4, (1, OUT_PAD), fill=NEG_BIG).astype(jnp.float32)

    tb_eff = _choose_batch_tile(B, tb)
    Bp = pl.cdiv(B, tb_eff) * tb_eff
    if Bp != B:
        # Rare path (B has no nice tile divisor): pad the tail. Padded rows are
        # zeros; they flow through the net harmlessly and are sliced off below.
        x2 = jnp.pad(x2, ((0, Bp - B), (0, 0)))
    n_steps = Bp // tb_eff

    # Weights/biases keep a constant block index -> DMA'd once, resident across steps.
    const2 = lambda shape: pl.BlockSpec(shape, lambda i: (0, 0))

    resident_bytes = ((w1p.size + w2p.size + w3p.size + w4p.size) * 2
                      + (b1p.size + b2p.size + b3p.size + b4p.size) * 4)
    vmem_need = (2 * tb_eff * IN_DIM * 4       # double-buffered f32 x tile
                 + 2 * tb_eff * OUT_PAD * 2    # double-buffered bf16 out tile
                 + 2 * resident_bytes          # weights/biases (pipelined pair)
                 + 8 * tb_eff * HID_PAD * 4)   # activation temporaries headroom
    vmem_limit = min(int(vmem_need * 1.25) + (1 << 20), 96 << 20)

    cost = pl.CostEstimate(
        flops=2 * Bp * (IN_DIM * HID_PAD + 2 * HID_PAD * HID_PAD + HID_PAD * OUT_PAD),
        transcendentals=Bp * OUT_PAD,
        bytes_accessed=(Bp * IN_DIM * 4            # x read (f32)
                        + resident_bytes           # weights/biases read once
                        + Bp * OUT_PAD * 2),       # bf16 softmax writeback
    )

    out = pl.pallas_call(
        mlp_kernel,
        out_shape=jax.ShapeDtypeStruct((Bp, OUT_PAD), jnp.bfloat16),
        grid_spec=pltpu.PrefetchScalarGridSpec(
            num_scalar_prefetch=0,
            grid=(n_steps,),
            in_specs=[
                pl.BlockSpec((tb_eff, IN_DIM), lambda i: (i, 0)),   # x streams per step
                const2((IN_DIM, HID_PAD)), const2((1, HID_PAD)),
                const2((HID_PAD, HID_PAD)), const2((1, HID_PAD)),
                const2((HID_PAD, HID_PAD)), const2((1, HID_PAD)),
                const2((HID_PAD, OUT_PAD)), const2((1, OUT_PAD)),
            ],
            out_specs=pl.BlockSpec((tb_eff, OUT_PAD), lambda i: (i, 0)),
        ),
        compiler_params=pltpu.CompilerParams(
            dimension_semantics=("parallel",),      # megacore sharding on v7x
            vmem_limit_bytes=vmem_limit,            # sized to the actual tile footprint
        ),
        cost_estimate=cost,
    )(x2, w1p, b1p, w2p, b2p, w3p, b3p, w4p, b4p)

    # Tiny (B, 10) slice + f32 cast outside the kernel.
    return out[:B, :OUT].astype(jnp.float32)


def init_params(key):
    """Deterministic init matching nn.Linear shapes (weights stored transposed: (in, out))."""
    def linear(key, fan_in, fan_out):
        kw, kb = jax.random.split(key)
        bound = 1.0 / jnp.sqrt(fan_in)
        w = jax.random.uniform(kw, (fan_in, fan_out), jnp.float32, -bound, bound)
        b = jax.random.uniform(kb, (1, fan_out), jnp.float32, -bound, bound)
        return w, b

    k1, k2, k3, k4 = jax.random.split(key, 4)
    return (
        linear(k1, IN_DIM, HID),
        linear(k2, HID, HID),
        linear(k3, HID, HID),
        linear(k4, HID, OUT),
    )


def mlp_reference(x, params):
    """Pure-JAX f32 reference matching the PyTorch forward."""
    B = x.shape[0]
    h = x.reshape(B, IN_DIM)
    (w1, b1), (w2, b2), (w3, b3), (w4, b4) = params
    h = jnp.maximum(h @ w1 + b1, 0.0)
    h = jnp.maximum(h @ w2 + b2, 0.0)
    h = jnp.maximum(h @ w3 + b3, 0.0)
    logits = h @ w4 + b4
    return jax.nn.softmax(logits, axis=1)


if __name__ == "__main__":
    key = jax.random.PRNGKey(0)
    kx, kp = jax.random.split(key)

    B = 8
    x = jax.random.normal(kx, (B, 3, 32, 32), jnp.float32)  # NCHW like PyTorch
    params = init_params(kp)

    out = mlp_forward(x, params)
    out = jax.block_until_ready(out)

    assert out.shape == (B, OUT)

    # softmax rows sum to ~1 (exact normalization; bf16 output rounding only)
    row_sums = jnp.sum(out, axis=1)
    assert bool(jnp.all(jnp.abs(row_sums - 1.0) < 5e-3)), row_sums

    # agree with the f32 reference up to bf16 matmul / output error
    ref = mlp_reference(x, params)
    assert bool(jnp.all(jnp.abs(out - ref) < 2e-2)), jnp.max(jnp.abs(out - ref))

    print("KERNEL_OK")
</pallas_src>

<mosaic_0001>
module attributes {stable_mosaic.version = 11 : i64} {
  func.func @mlp_kernel(%arg0: i32, %arg1: memref<8x3072xf32, #tpu.memory_space<vmem>>, %arg2: memref<3072x128xbf16, #tpu.memory_space<vmem>>, %arg3: memref<1x128xf32, #tpu.memory_space<vmem>>, %arg4: memref<128x128xbf16, #tpu.memory_space<vmem>>, %arg5: memref<1x128xf32, #tpu.memory_space<vmem>>, %arg6: memref<128x128xbf16, #tpu.memory_space<vmem>>, %arg7: memref<1x128xf32, #tpu.memory_space<vmem>>, %arg8: memref<128x128xbf16, #tpu.memory_space<vmem>>, %arg9: memref<1x128xf32, #tpu.memory_space<vmem>>, %arg10: memref<8x128xbf16, #tpu.memory_space<vmem>>) attributes {dimension_semantics = [#tpu.dimension_semantics<parallel>], iteration_bounds = array<i64: 1>, scalar_prefetch = 0 : i64, scratch_operands = 0 : i64, tpu.core_type = #tpu.core_type<tc>, window_params = [{transform_indices = @transform_0, window_bounds = array<i64: 8, 3072>}, {pipeline_mode = #tpu.pipeline_mode<synchronous>, transform_indices = @transform_1, window_bounds = array<i64: 3072, 128>}, {pipeline_mode = #tpu.pipeline_mode<synchronous>, transform_indices = @transform_2, window_bounds = array<i64: 1, 128>}, {pipeline_mode = #tpu.pipeline_mode<synchronous>, transform_indices = @transform_3, window_bounds = array<i64: 128, 128>}, {pipeline_mode = #tpu.pipeline_mode<synchronous>, transform_indices = @transform_4, window_bounds = array<i64: 1, 128>}, {pipeline_mode = #tpu.pipeline_mode<synchronous>, transform_indices = @transform_5, window_bounds = array<i64: 128, 128>}, {pipeline_mode = #tpu.pipeline_mode<synchronous>, transform_indices = @transform_6, window_bounds = array<i64: 1, 128>}, {pipeline_mode = #tpu.pipeline_mode<synchronous>, transform_indices = @transform_7, window_bounds = array<i64: 128, 128>}, {pipeline_mode = #tpu.pipeline_mode<synchronous>, transform_indices = @transform_8, window_bounds = array<i64: 1, 128>}, {transform_indices = @transform_9, window_bounds = array<i64: 8, 128>}]} {
    %c0 = arith.constant 0 : index
    %c0_0 = arith.constant 0 : index
    %0 = vector.load %arg1[%c0, %c0_0] : memref<8x3072xf32, #tpu.memory_space<vmem>>, vector<8x3072xf32>
    %1 = arith.truncf %0 : vector<8x3072xf32> to vector<8x3072xbf16>
    %c0_1 = arith.constant 0 : index
    %c0_2 = arith.constant 0 : index
    %2 = vector.load %arg2[%c0_1, %c0_2] : memref<3072x128xbf16, #tpu.memory_space<vmem>>, vector<3072x128xbf16>
    %cst = arith.constant dense<0.000000e+00> : vector<8x128xf32>
    %3 = tpu.matmul %1, %2, %cst {dimension_numbers = #tpu.dot_dimension_numbers<[1], [0], [0], [1], [0, 0, 1, 1], [], []>} : vector<8x3072xbf16>, vector<3072x128xbf16>, vector<8x128xf32> -> vector<8x128xf32>
    %c0_3 = arith.constant 0 : index
    %c0_4 = arith.constant 0 : index
    %4 = vector.load %arg3[%c0_3, %c0_4] : memref<1x128xf32, #tpu.memory_space<vmem>>, vector<1x128xf32>
    %5 = vector.broadcast %4 : vector<1x128xf32> to vector<8x128xf32>
    %6 = arith.addf %3, %5 : vector<8x128xf32>
    %cst_5 = arith.constant 0.000000e+00 : f32
    %7 = vector.broadcast %cst_5 : f32 to vector<8x128xf32>
    %8 = arith.maximumf %6, %7 : vector<8x128xf32>
    %9 = arith.truncf %8 : vector<8x128xf32> to vector<8x128xbf16>
    %c0_6 = arith.constant 0 : index
    %c0_7 = arith.constant 0 : index
    %10 = vector.load %arg4[%c0_6, %c0_7] : memref<128x128xbf16, #tpu.memory_space<vmem>>, vector<128x128xbf16>
    %cst_8 = arith.constant dense<0.000000e+00> : vector<8x128xf32>
    %11 = tpu.matmul %9, %10, %cst_8 {dimension_numbers = #tpu.dot_dimension_numbers<[1], [0], [0], [1], [0, 0, 1, 1], [], []>} : vector<8x128xbf16>, vector<128x128xbf16>, vector<8x128xf32> -> vector<8x128xf32>
    %c0_9 = arith.constant 0 : index
    %c0_10 = arith.constant 0 : index
    %12 = vector.load %arg5[%c0_9, %c0_10] : memref<1x128xf32, #tpu.memory_space<vmem>>, vector<1x128xf32>
    %13 = vector.broadcast %12 : vector<1x128xf32> to vector<8x128xf32>
    %14 = arith.addf %11, %13 : vector<8x128xf32>
    %cst_11 = arith.constant 0.000000e+00 : f32
    %15 = vector.broadcast %cst_11 : f32 to vector<8x128xf32>
    %16 = arith.maximumf %14, %15 : vector<8x128xf32>
    %17 = arith.truncf %16 : vector<8x128xf32> to vector<8x128xbf16>
    %c0_12 = arith.constant 0 : index
    %c0_13 = arith.constant 0 : index
    %18 = vector.load %arg6[%c0_12, %c0_13] : memref<128x128xbf16, #tpu.memory_space<vmem>>, vector<128x128xbf16>
    %cst_14 = arith.constant dense<0.000000e+00> : vector<8x128xf32>
    %19 = tpu.matmul %17, %18, %cst_14 {dimension_numbers = #tpu.dot_dimension_numbers<[1], [0], [0], [1], [0, 0, 1, 1], [], []>} : vector<8x128xbf16>, vector<128x128xbf16>, vector<8x128xf32> -> vector<8x128xf32>
    %c0_15 = arith.constant 0 : index
    %c0_16 = arith.constant 0 : index
    %20 = vector.load %arg7[%c0_15, %c0_16] : memref<1x128xf32, #tpu.memory_space<vmem>>, vector<1x128xf32>
    %21 = vector.broadcast %20 : vector<1x128xf32> to vector<8x128xf32>
    %22 = arith.addf %19, %21 : vector<8x128xf32>
    %cst_17 = arith.constant 0.000000e+00 : f32
    %23 = vector.broadcast %cst_17 : f32 to vector<8x128xf32>
    %24 = arith.maximumf %22, %23 : vector<8x128xf32>
    %25 = arith.truncf %24 : vector<8x128xf32> to vector<8x128xbf16>
    %c0_18 = arith.constant 0 : index
    %c0_19 = arith.constant 0 : index
    %26 = vector.load %arg8[%c0_18, %c0_19] : memref<128x128xbf16, #tpu.memory_space<vmem>>, vector<128x128xbf16>
    %cst_20 = arith.constant dense<0.000000e+00> : vector<8x128xf32>
    %27 = tpu.matmul %25, %26, %cst_20 {dimension_numbers = #tpu.dot_dimension_numbers<[1], [0], [0], [1], [0, 0, 1, 1], [], []>} : vector<8x128xbf16>, vector<128x128xbf16>, vector<8x128xf32> -> vector<8x128xf32>
    %c0_21 = arith.constant 0 : index
    %c0_22 = arith.constant 0 : index
    %28 = vector.load %arg9[%c0_21, %c0_22] : memref<1x128xf32, #tpu.memory_space<vmem>>, vector<1x128xf32>
    %29 = vector.broadcast %28 : vector<1x128xf32> to vector<8x128xf32>
    %30 = arith.addf %27, %29 : vector<8x128xf32>
    %cst_23 = arith.constant dense<0xFF800000> : vector<8xf32>
    %31 = vector.multi_reduction <maximumf>, %30, %cst_23 [1] : vector<8x128xf32> to vector<8xf32>
    %32 = vector.shape_cast %31 : vector<8xf32> to vector<8x1xf32>
    %33 = vector.broadcast %32 : vector<8x1xf32> to vector<8x128xf32>
    %34 = arith.subf %30, %33 : vector<8x128xf32>
    %35 = math.exp %34 : vector<8x128xf32>
    %cst_24 = arith.constant dense<0.000000e+00> : vector<8xf32>
    %36 = vector.multi_reduction <add>, %35, %cst_24 [1] : vector<8x128xf32> to vector<8xf32>
    %37 = vector.shape_cast %36 : vector<8xf32> to vector<8x1xf32>
    %38 = vector.broadcast %37 : vector<8x1xf32> to vector<8x128xf32>
    %39 = arith.divf %35, %38 : vector<8x128xf32>
    %40 = arith.truncf %39 : vector<8x128xf32> to vector<8x128xbf16>
    %c0_25 = arith.constant 0 : index
    %c0_26 = arith.constant 0 : index
    %41 = vector.load %arg10[%c0_25, %c0_26] : memref<8x128xbf16, #tpu.memory_space<vmem>>, vector<8x128xbf16>
    tpu.vector_store %arg10[%c0_25, %c0_26], %40 {strides = array<i32>} : memref<8x128xbf16, #tpu.memory_space<vmem>>, vector<8x128xbf16>,
    return
  }
  func.func @transform_0(%arg0: i32) -> (i32, i32) {
    %c0_i32 = arith.constant 0 : i32
    %c0_i32_0 = arith.constant 0 : i32
    return %arg0, %c0_i32 : i32, i32
  }
  func.func @transform_1(%arg0: i32) -> (i32, i32) {
    %c0_i32 = arith.constant 0 : i32
    %c0_i32_0 = arith.constant 0 : i32
    %c0_i32_1 = arith.constant 0 : i32
    return %c0_i32, %c0_i32_0 : i32, i32
  }
  func.func @transform_2(%arg0: i32) -> (i32, i32) {
    %c0_i32 = arith.constant 0 : i32
    %c0_i32_0 = arith.constant 0 : i32
    %c0_i32_1 = arith.constant 0 : i32
    return %c0_i32, %c0_i32_0 : i32, i32
  }
  func.func @transform_3(%arg0: i32) -> (i32, i32) {
    %c0_i32 = arith.constant 0 : i32
    %c0_i32_0 = arith.constant 0 : i32
    %c0_i32_1 = arith.constant 0 : i32
    return %c0_i32, %c0_i32_0 : i32, i32
  }
  func.func @transform_4(%arg0: i32) -> (i32, i32) {
    %c0_i32 = arith.constant 0 : i32
    %c0_i32_0 = arith.constant 0 : i32
    %c0_i32_1 = arith.constant 0 : i32
    return %c0_i32, %c0_i32_0 : i32, i32
  }
  func.func @transform_5(%arg0: i32) -> (i32, i32) {
    %c0_i32 = arith.constant 0 : i32
    %c0_i32_0 = arith.constant 0 : i32
    %c0_i32_1 = arith.constant 0 : i32
    return %c0_i32, %c0_i32_0 : i32, i32
  }
  func.func @transform_6(%arg0: i32) -> (i32, i32) {
    %c0_i32 = arith.constant 0 : i32
    %c0_i32_0 = arith.constant 0 : i32
    %c0_i32_1 = arith.constant 0 : i32
    return %c0_i32, %c0_i32_0 : i32, i32
  }
  func.func @transform_7(%arg0: i32) -> (i32, i32) {
    %c0_i32 = arith.constant 0 : i32
    %c0_i32_0 = arith.constant 0 : i32
    %c0_i32_1 = arith.constant 0 : i32
    return %c0_i32, %c0_i32_0 : i32, i32
  }
  func.func @transform_8(%arg0: i32) -> (i32, i32) {
    %c0_i32 = arith.constant 0 : i32
    %c0_i32_0 = arith.constant 0 : i32
    %c0_i32_1 = arith.constant 0 : i32
    return %c0_i32, %c0_i32_0 : i32, i32
  }
  func.func @transform_9(%arg0: i32) -> (i32, i32) {
    %c0_i32 = arith.constant 0 : i32
    %c0_i32_0 = arith.constant 0 : i32
    return %arg0, %c0_i32 : i32, i32
  }
}

</mosaic_0001>

<bundles_post_ra>
// kernel: tpu_custom_call.1
= control target key start
LH: loop header
LB: loop body
LE: loop exit
PB: predicated region body
PF: predicated region fallthrough
CT: control target
= control target key end

     0   :  { %14 = vsyncpa [#allocation3], 0  ;;  %s3665_s0 = inlined_call_operand.hbm [shape: f32[8,3072], index: 0, kind: input, shape index: {}]   ;;  %s3666_s1 = inlined_call_operand.hbm [shape: bf16[3072,128], index: 1, kind: input, shape index: {}]   ;;  %s3667_s2 = inlined_call_operand.vmem [shape: f32[1,128], index: 2, kind: input, shape index: {}]   ;;  %s3668_s3 = inlined_call_operand.hbm [shape: bf16[128,128], index: 3, kind: input, shape index: {}]   ;;  %s3669_s4 = inlined_call_operand.vmem [shape: f32[1,128], index: 4, kind: input, shape index: {}]   ;;  %s3670_s5 = inlined_call_operand.hbm [shape: bf16[128,128], index: 5, kind: input, shape index: {}]   ;;  %s3671_s6 = inlined_call_operand.vmem [shape: f32[1,128], index: 6, kind: input, shape index: {}]   ;;  %s3672_s7 = inlined_call_operand.hbm [shape: bf16[128,128], index: 7, kind: input, shape index: {}]   ;;  %s3673_s8 = inlined_call_operand.vmem [shape: f32[1,128], index: 8, kind: input, shape index: {}]   ;;  %s3674_s9 = inlined_call_operand.hbm [shape: bf16[8,128], index: 9, kind: output, shape index: {}]  }
   0x1   :  { %15 = vsyncpa [#allocation6], 0 }
   0x2   :  { %16 = vsyncpa [#allocation9], 0 }
   0x3   :  { %17 = vsyncpa [#allocation4], 0  ;;  %s3479_s30 = smov [#allocation5]   ;;  %s3339_s13 = scalar_lea.hbm %s3666_s1, 24576 }
   0x4   :  { %s33_s10 = sshll.u32 %s3479_s30, 4  ;;  %p3340_p0 = scmp.ne.s32.totalorder %s3666_s1, %s3339_s13  ;;  %s34_s10 = int_to_ptr.vmem [resolvable:$true] %s33_s10 }
   0x5   :  { %p3343_p1 = scmp.lt.u32.totalorder %s3339_s13, %s3666_s1 }
   0x7   :  { %p3345_p2 = pnand %p3343_p1, %p3340_p0 }
   0x9   :  { %3348 = shalt.err (!%p3345_p2)
}
   0xa   :  { %s3349_s18 = scalar_lea.vmem %s34_s10, 24576  ;;  %p3354_p4 = scmp.lt.s32.totalorder %s34_s10, %s34_s10 }
   0xb   :  { %p3350_p3 = scmp.ne.s32.totalorder %s34_s10, %s3349_s18  ;;  %p3355_p5 = scmp.lt.s32.totalorder %s3349_s18, %s3349_s18 }
   0xd   :  { %p3356_p6 = por %p3355_p5, %p3354_p4 }
   0xf   :  { %p3357_p7 = pnand %p3356_p6, %p3350_p3 }
  0x11   :  { %3360 = shalt.err (!%p3357_p7)
}
  0x12   :  { %s3480_s19 = smov 64   ;;  %s3481_s20 = smov 4  }
  0x13   :  { %39 = dma.hbm_to_vmem [thread:$0]  %s3666_s1, 24576, %s34_s10, [#allocation6], %s3480_s19, %s3480_s19, %s3481_s20  }
  0x14   :  { %s3482_s23 = smov [#allocation8]   ;;  %s3483_s25 = smov [#allocation2]  }
  0x15   :  { %s61_s24 = sshll.u32 %s3482_s23, 4  ;;  %s24_s26 = sshll.u32 %s3483_s25, 4  ;;  %s62_s24 = int_to_ptr.vmem [resolvable:$true] %s61_s24  ;;  %s25_s26 = int_to_ptr.vmem [resolvable:$true] %s24_s26 }
  0x16   :  { %s3361_s29 = scalar_lea.hbm %s3670_s5, 1024 }
  0x17   :  { %p3362_p8 = scmp.ne.s32.totalorder %s3670_s5, %s3361_s29  ;;  %p3365_p9 = scmp.lt.u32.totalorder %s3361_s29, %s3670_s5 }
  0x19   :  { %p3367_p10 = pnand %p3365_p9, %p3362_p8 }
  0x1b   :  { %3370 = shalt.err (!%p3367_p10)
}
  0x1c   :  { %s3371_s1 = scalar_lea.vmem %s62_s24, 1024  ;;  %p3376_p12 = scmp.lt.s32.totalorder %s62_s24, %s62_s24 }
  0x1d   :  { %p3372_p11 = scmp.ne.s32.totalorder %s62_s24, %s3371_s1  ;;  %p3377_p13 = scmp.lt.s32.totalorder %s3371_s1, %s3371_s1 }
  0x1f   :  { %p3378_p0 = por %p3377_p13, %p3376_p12 }
  0x21   :  { %p3379_p1 = pnand %p3378_p0, %p3372_p11 }
  0x23   :  { %3382 = shalt.err (!%p3379_p1)
}
  0x24   :  { %67 = dma.hbm_to_vmem [thread:$0]  %s3670_s5, 1024, %s62_s24, [#allocation9], %s3480_s19, %s3480_s19, %s3481_s20  }
  0x25   :  { %s3383_s17 = scalar_lea.hbm %s3665_s0, 3072 }
  0x26   :  { %p3384_p2 = scmp.ne.s32.totalorder %s3665_s0, %s3383_s17  ;;  %p3387_p3 = scmp.lt.u32.totalorder %s3383_s17, %s3665_s0 }
  0x28   :  { %p3389_p4 = pnand %p3387_p3, %p3384_p2 }
  0x2a   :  { %3392 = shalt.err (!%p3389_p4)
}
  0x2b   :  { %s3393_s25 = scalar_lea.vmem %s25_s26, 3072  ;;  %p3398_p6 = scmp.lt.s32.totalorder %s25_s26, %s25_s26 }
  0x2c   :  { %p3394_p5 = scmp.ne.s32.totalorder %s25_s26, %s3393_s25  ;;  %p3399_p7 = scmp.lt.s32.totalorder %s3393_s25, %s3393_s25 }
  0x2e   :  { %p3400_p8 = por %p3399_p7, %p3398_p6 }
  0x30   :  { %p3401_p9 = pnand %p3400_p8, %p3394_p5 }
  0x32   :  { %3404 = shalt.err (!%p3401_p9)
}
  0x33   :  { %27 = dma.hbm_to_vmem [thread:$0]  %s3665_s0, 3072, %s25_s26, [#allocation3]  }
  0x34   :  { %s3484_s27 = smov [#allocation7]   ;;  %s3485_s29 = smov [#allocation10]  }
  0x35   :  { %s47_s28 = sshll.u32 %s3484_s27, 4  ;;  %s75_s30 = sshll.u32 %s3485_s29, 4  ;;  %s48_s28 = int_to_ptr.vmem [resolvable:$true] %s47_s28  ;;  %s76_s30 = int_to_ptr.vmem [resolvable:$true] %s75_s30 }
  0x36   :  { %s3405_s13 = scalar_lea.hbm %s3668_s3, 1024 }
  0x37   :  { %p3406_p10 = scmp.ne.s32.totalorder %s3668_s3, %s3405_s13  ;;  %p3409_p11 = scmp.lt.u32.totalorder %s3405_s13, %s3668_s3 }
  0x39   :  { %p3411_p12 = pnand %p3409_p11, %p3406_p10 }
  0x3b   :  { %3414 = shalt.err (!%p3411_p12)
}
  0x3c   :  { %s3415_s0 = scalar_lea.vmem %s48_s28, 1024  ;;  %p3420_p0 = scmp.lt.s32.totalorder %s48_s28, %s48_s28 }
  0x3d   :  { %p3416_p13 = scmp.ne.s32.totalorder %s48_s28, %s3415_s0  ;;  %p3421_p1 = scmp.lt.s32.totalorder %s3415_s0, %s3415_s0 }
  0x3f   :  { %p3422_p2 = por %p3421_p1, %p3420_p0 }
  0x41   :  { %p3423_p3 = pnand %p3422_p2, %p3416_p13 }
  0x43   :  { %3426 = shalt.err (!%p3423_p3)
}
  0x44   :  { %53 = dma.hbm_to_vmem [thread:$0]  %s3668_s3, 1024, %s48_s28, [#allocation6], %s3480_s19, %s3480_s19, %s3481_s20  }
  0x45   :  { %s3427_s21 = scalar_lea.hbm %s3672_s7, 1024 }
  0x46   :  { %p3428_p4 = scmp.ne.s32.totalorder %s3672_s7, %s3427_s21  ;;  %p3431_p5 = scmp.lt.u32.totalorder %s3427_s21, %s3672_s7 }
  0x48   :  { %p3433_p6 = pnand %p3431_p5, %p3428_p4 }
  0x4a   :  { %3436 = shalt.err (!%p3433_p6)
}
  0x4b   :  { %s3437_s24 = scalar_lea.vmem %s76_s30, 1024  ;;  %p3442_p8 = scmp.lt.s32.totalorder %s76_s30, %s76_s30 }
  0x4c   :  { %p3438_p7 = scmp.ne.s32.totalorder %s76_s30, %s3437_s24  ;;  %p3443_p9 = scmp.lt.s32.totalorder %s3437_s24, %s3437_s24 }
  0x4e   :  { %p3444_p10 = por %p3443_p9, %p3442_p8 }
  0x50   :  { %p3445_p11 = pnand %p3444_p10, %p3438_p7 }
  0x52   :  { %3448 = shalt.err (!%p3445_p11)
}
  0x53   :  { %81 = dma.hbm_to_vmem [thread:$0]  %s3672_s7, 1024, %s76_s30, [#allocation9], %s3480_s19, %s3480_s19, %s3481_s20  }
  0x54   :  { %3471 = dma.done.wait [#allocation3], 3072  }
  0x55   :  { %3472 = vsyncadd [#allocation3], 4294964224 }
  0x56   :  { %3473 = dma.done.wait [#allocation6], 25600  }
  0x57   :  { %3474 = vsyncadd [#allocation6], 4294941696 }
  0x58   :  { %3475 = dma.done.wait [#allocation9], 2048  }
  0x59   :  { %3476 = vsyncadd [#allocation9], 4294965248  ;;  %v3119_v0 = vld [vmem:[#allocation5 + $0x40] sm:$0xff]   ;;  %v3123_v4 = vld [vmem:[#allocation5 + $0x48] sm:$0xff]   ;;  %vm3487_vm0 = vmmov 0  }
  0x5a   :  { %v3120_v1 = vld [vmem:[#allocation5 + $0xc0] sm:$0xff]   ;;  %2758 = vmatprep.subr.bf16.mxu0 %v3119_v0  ;;  %v3124_v5 = vld [vmem:[#allocation5 + $0xc8] sm:$0xff]   ;;  %v3127_v8 = vld [vmem:[#allocation5 + $0x50] sm:$0xff]  }
  0x5b   :  { %v3121_v2 = vld [vmem:[#allocation5] sm:$0xff]   ;;  %2780 = vmatprep.subr.bf16.mxu1 %v3120_v1  ;;  %v3125_v6 = vld [vmem:[#allocation5 + $0x8] sm:$0xff]   ;;  %v3128_v9 = vld [vmem:[#allocation5 + $0xd0] sm:$0xff]  }
  0x5c   :  { %v3122_v3 = vld [vmem:[#allocation5 + $0x80] sm:$0xff]   ;;  %2759 = vmatpush3.bf16.msra.mxu0 %v3121_v2  ;;  %v3126_v7 = vld [vmem:[#allocation5 + $0x88] sm:$0xff]   ;;  %v3129_v10 = vld [vmem:[#allocation5 + $0x10] sm:$0xff]  }
  0x5d   :  { %2781 = vmatpush3.bf16.msra.mxu1 %v3122_v3  ;;  %2760 = vmatprep.subr.bf16.mxu0 %v3123_v4  ;;  %v3130_v11 = vld [vmem:[#allocation5 + $0x90] sm:$0xff]   ;;  %v3131_v12 = vld [vmem:[#allocation5 + $0x58] sm:$0xff]   ;;  %v3135_v16 = vld [vmem:[#allocation5 + $0x60] sm:$0xff]  }
  0x5e   :  { %2782 = vmatprep.subr.bf16.mxu1 %v3124_v5  ;;  %v3132_v13 = vld [vmem:[#allocation5 + $0xd8] sm:$0xff]   ;;  %v3136_v17 = vld [vmem:[#allocation5 + $0xe0] sm:$0xff]   ;;  %v3139_v20 = vld [vmem:[#allocation5 + $0x68] sm:$0xff]  }
  0x5f   :  { %v3133_v14 = vld [vmem:[#allocation5 + $0x18] sm:$0xff]   ;;  %v3137_v18 = vld [vmem:[#allocation5 + $0x20] sm:$0xff]   ;;  %v3140_v21 = vld [vmem:[#allocation5 + $0xe8] sm:$0xff]  }
  0x60   :  { %2761 = vmatpush3.bf16.msra.mxu0 %v3125_v6  ;;  %v3134_v15 = vld [vmem:[#allocation5 + $0x98] sm:$0xff]   ;;  %v3138_v19 = vld [vmem:[#allocation5 + $0xa0] sm:$0xff]   ;;  %v3141_v22 = vld [vmem:[#allocation5 + $0x28] sm:$0xff]  }
  0x61   :  { %2783 = vmatpush3.bf16.msra.mxu1 %v3126_v7  ;;  %2762 = vmatprep.subr.bf16.mxu0 %v3127_v8  ;;  %v3142_v23 = vld [vmem:[#allocation5 + $0xa8] sm:$0xff]   ;;  %v3143_v24 = vld [vmem:[#allocation5 + $0x70] sm:$0xff]   ;;  %v3147_v28 = vld [vmem:[#allocation5 + $0x78] sm:$0xff]  }
  0x62   :  { %2784 = vmatprep.subr.bf16.mxu1 %v3128_v9  ;;  %v3144_v25 = vld [vmem:[#allocation5 + $0xf0] sm:$0xff]   ;;  %v3148_v29 = vld [vmem:[#allocation5 + $0xf8] sm:$0xff]   ;;  %v101_v32 = vld [vmem:[#allocation2 + $0x8] sm:$0xff] }
  0x63   :  { %v3145_v26 = vld [vmem:[#allocation5 + $0x30] sm:$0xff]   ;;  %v3149_v30 = vld [vmem:[#allocation5 + $0x38] sm:$0xff]   ;;  %v100_v34 = vld [vmem:[#allocation2] sm:$0xff]  ;;  %v125_v35 = vpack.c.bf16 %v101_v32, %v101_v32 }
  0x64   :  { %2763 = vmatpush3.bf16.msra.mxu0 %v3129_v10  ;;  %v3146_v27 = vld [vmem:[#allocation5 + $0xb0] sm:$0xff]   ;;  %v3150_v31 = vld [vmem:[#allocation5 + $0xb8] sm:$0xff]   ;;  %v124_v37 = vpack.c.bf16 %v100_v34, %v100_v34  ;;  %v3151_v40 = vld [vmem:[#allocation5 + $0x140] sm:$0xff]  }
  0x65   :  { %2785 = vmatpush3.bf16.msra.mxu1 %v3130_v11  ;;  %2764 = vmatprep.subr.bf16.mxu0 %v3131_v12  ;;  %v103_v33 = vld [vmem:[#allocation2 + $0x18] sm:$0xff]  ;;  %v102_v38 = vld [vmem:[#allocation2 + $0x10] sm:$0xff]  ;;  %v3152_v41 = vld [vmem:[#allocation5 + $0x1c0] sm:$0xff]  }
  0x66   :  { %2786 = vmatprep.subr.bf16.mxu1 %v3132_v13  ;;  %v127_v36 = vpack.c.bf16 %v103_v33, %v103_v33  ;;  %v126_v39 = vpack.c.bf16 %v102_v38, %v102_v38  ;;  %1723 = vmatprep.mubr.bf16.mxu0 %v125_v35  ;;  %v3153_v42 = vld [vmem:[#allocation5 + $0x100] sm:$0xff]   ;;  %v3155_v44 = vld [vmem:[#allocation5 + $0x148] sm:$0xff]   ;;  %v3159_v48 = vld [vmem:[#allocation5 + $0x150] sm:$0xff]  }
  0x67   :  { %v3154_v43 = vld [vmem:[#allocation5 + $0x180] sm:$0xff]   ;;  %v3156_v45 = vld [vmem:[#allocation5 + $0x1c8] sm:$0xff]   ;;  %v3160_v49 = vld [vmem:[#allocation5 + $0x1d0] sm:$0xff]  }
  0x68   :  { %2765 = vmatpush3.bf16.msra.mxu0 %v3133_v14  ;;  %1763 = vmatprep.mubr.bf16.mxu1 %v127_v36  ;;  %v3157_v46 = vld [vmem:[#allocation5 + $0x108] sm:$0xff]   ;;  %v3161_v50 = vld [vmem:[#allocation5 + $0x110] sm:$0xff]   ;;  %v3163_v52 = vld [vmem:[#allocation5 + $0x158] sm:$0xff]  }
  0x69   :  { %2787 = vmatpush3.bf16.msra.mxu1 %v3134_v15  ;;  %2766 = vmatprep.subr.bf16.mxu0 %v3135_v16  ;;  %v3158_v47 = vld [vmem:[#allocation5 + $0x188] sm:$0xff]   ;;  %v3162_v51 = vld [vmem:[#allocation5 + $0x190] sm:$0xff]   ;;  %v3164_v53 = vld [vmem:[#allocation5 + $0x1d8] sm:$0xff]  }
  0x6a   :  { %2788 = vmatprep.subr.bf16.mxu1 %v3136_v17  ;;  %v3165_v54 = vld [vmem:[#allocation5 + $0x118] sm:$0xff]   ;;  %v3167_v56 = vld [vmem:[#allocation5 + $0x160] sm:$0xff]   ;;  %v3171_v60 = vld [vmem:[#allocation5 + $0x168] sm:$0xff]  }
  0x6b   :  { %v3166_v55 = vld [vmem:[#allocation5 + $0x198] sm:$0xff]   ;;  %v3168_v57 = vld [vmem:[#allocation5 + $0x1e0] sm:$0xff]   ;;  %v3172_v61 = vld [vmem:[#allocation5 + $0x1e8] sm:$0xff]  }
  0x6c   :  { %2767 = vmatpush3.bf16.msra.mxu0 %v3137_v18  ;;  %v3169_v58 = vld [vmem:[#allocation5 + $0x120] sm:$0xff]   ;;  %v3173_v62 = vld [vmem:[#allocation5 + $0x128] sm:$0xff]   ;;  %v3175_v0 = vld [vmem:[#allocation5 + $0x170] sm:$0xff]  }
  0x6d   :  { %2789 = vmatpush3.bf16.msra.mxu1 %v3138_v19  ;;  %2768 = vmatprep.subr.bf16.mxu0 %v3139_v20  ;;  %v3170_v59 = vld [vmem:[#allocation5 + $0x1a0] sm:$0xff]   ;;  %v3174_v63 = vld [vmem:[#allocation5 + $0x1a8] sm:$0xff]   ;;  %v3176_v1 = vld [vmem:[#allocation5 + $0x1f0] sm:$0xff]  }
  0x6e   :  { %2790 = vmatprep.subr.bf16.mxu1 %v3140_v21  ;;  %v3177_v2 = vld [vmem:[#allocation5 + $0x130] sm:$0xff]   ;;  %v3179_v4 = vld [vmem:[#allocation5 + $0x178] sm:$0xff]   ;;  %v105_v8 = vld [vmem:[#allocation2 + $0x28] sm:$0xff] }
  0x6f   :  { %v3178_v3 = vld [vmem:[#allocation5 + $0x1b0] sm:$0xff]   ;;  %v3180_v5 = vld [vmem:[#allocation5 + $0x1f8] sm:$0xff]   ;;  %v129_v10 = vpack.c.bf16 %v105_v8, %v105_v8  ;;  %v104_v12 = vld [vmem:[#allocation2 + $0x20] sm:$0xff] }
  0x70   :  { %2769 = vmatpush3.bf16.msra.mxu0 %v3141_v22  ;;  %v3181_v6 = vld [vmem:[#allocation5 + $0x138] sm:$0xff]   ;;  %v106_v13 = vld [vmem:[#allocation2 + $0x30] sm:$0xff]  ;;  %v128_v14 = vpack.c.bf16 %v104_v12, %v104_v12  ;;  %v3183_v16 = vld [vmem:[#allocation5 + $0x240] sm:$0xff]  }
  0x71   :  { %2791 = vmatpush3.bf16.msra.mxu1 %v3142_v23  ;;  %2770 = vmatprep.subr.bf16.mxu0 %v3143_v24  ;;  %v3182_v7 = vld [vmem:[#allocation5 + $0x1b8] sm:$0xff]   ;;  %v130_v15 = vpack.c.bf16 %v106_v13, %v106_v13  ;;  %v3184_v17 = vld [vmem:[#allocation5 + $0x2c0] sm:$0xff]   ;;  %v3187_v20 = vld [vmem:[#allocation5 + $0x248] sm:$0xff]  }
  0x72   :  { %2792 = vmatprep.subr.bf16.mxu1 %v3144_v25  ;;  %v107_v9 = vld [vmem:[#allocation2 + $0x38] sm:$0xff]  ;;  %v3185_v18 = vld [vmem:[#allocation5 + $0x200] sm:$0xff]   ;;  %v3188_v21 = vld [vmem:[#allocation5 + $0x2c8] sm:$0xff]  }
  0x73   :  { %v131_v11 = vpack.c.bf16 %v107_v9, %v107_v9  ;;  %v3186_v19 = vld [vmem:[#allocation5 + $0x280] sm:$0xff]   ;;  %v3189_v22 = vld [vmem:[#allocation5 + $0x208] sm:$0xff]   ;;  %v3191_v24 = vld [vmem:[#allocation5 + $0x250] sm:$0xff]  }
  0x74   :  { %2771 = vmatpush3.bf16.msra.mxu0 %v3145_v26  ;;  %v3190_v23 = vld [vmem:[#allocation5 + $0x288] sm:$0xff]   ;;  %v3192_v25 = vld [vmem:[#allocation5 + $0x2d0] sm:$0xff]   ;;  %v3199_v32 = vld [vmem:[#allocation5 + $0x260] sm:$0xff]  }
  0x75   :  { %2793 = vmatpush3.bf16.msra.mxu1 %v3146_v27  ;;  %2772 = vmatprep.subr.bf16.mxu0 %v3147_v28  ;;  %v3193_v26 = vld [vmem:[#allocation5 + $0x210] sm:$0xff]   ;;  %v3195_v28 = vld [vmem:[#allocation5 + $0x258] sm:$0xff]   ;;  %v3200_v33 = vld [vmem:[#allocation5 + $0x2e0] sm:$0xff]  }
  0x76   :  { %2794 = vmatprep.subr.bf16.mxu1 %v3148_v29  ;;  %v3194_v27 = vld [vmem:[#allocation5 + $0x290] sm:$0xff]   ;;  %v3196_v29 = vld [vmem:[#allocation5 + $0x2d8] sm:$0xff]   ;;  %v3201_v34 = vld [vmem:[#allocation5 + $0x220] sm:$0xff]  }
  0x77   :  { %v3202_v35 = vld [vmem:[#allocation5 + $0x2a0] sm:$0xff]   ;;  %v3203_v36 = vld [vmem:[#allocation5 + $0x268] sm:$0xff]  }
  0x78   :  { %2773 = vmatpush3.bf16.msra.mxu0 %v3149_v30  ;;  %v3197_v30 = vld [vmem:[#allocation5 + $0x218] sm:$0xff]   ;;  %v3205_v38 = vld [vmem:[#allocation5 + $0x228] sm:$0xff]   ;;  %v3231_v8 = vld [vmem:[#allocation5 + $0x360] sm:$0xff]  }
  0x79   :  { %2795 = vmatpush3.bf16.msra.mxu1 %v3150_v31  ;;  %2802 = vmatprep.subr.bf16.mxu0 %v3151_v40  ;;  %v3198_v31 = vld [vmem:[#allocation5 + $0x298] sm:$0xff]   ;;  %v3207_v40 = vld [vmem:[#allocation5 + $0x270] sm:$0xff]   ;;  %v3232_v9 = vld [vmem:[#allocation5 + $0x3e0] sm:$0xff]  }
  0x7a   :  { %2824 = vmatprep.subr.bf16.mxu1 %v3152_v41  ;;  %v3208_v41 = vld [vmem:[#allocation5 + $0x2f0] sm:$0xff]   ;;  %v3235_v12 = vld [vmem:[#allocation5 + $0x368] sm:$0xff]  }
  0x7b   :  { %1724 = vmatmul.mubr.bf16.vlgmr.msra.gmra.mrb[0].mxu0 %v124_v37  ;;  %v3204_v37 = vld [vmem:[#allocation5 + $0x2e8] sm:$0xff]  }
  0x7c   :  { %1764 = vmatmul.mubr.bf16.vlgmr.msra.gmra.mrb[0].mxu1 %v126_v39  ;;  %2803 = vmatpush3.bf16.msra.mxu0 %v3153_v42  ;;  %v3206_v39 = vld [vmem:[#allocation5 + $0x2a8] sm:$0xff]   ;;  %v3209_v42 = vld [vmem:[#allocation5 + $0x230] sm:$0xff]  }
  0x7d   :  { %2825 = vmatpush3.bf16.msra.mxu1 %v3154_v43  ;;  %2804 = vmatprep.subr.bf16.mxu0 %v3155_v44  ;;  %v3210_v43 = vld [vmem:[#allocation5 + $0x2b0] sm:$0xff]   ;;  %v3211_v44 = vld [vmem:[#allocation5 + $0x278] sm:$0xff]   ;;  %v3236_v13 = vld [vmem:[#allocation5 + $0x3e8] sm:$0xff]  }
  0x7e   :  { %2826 = vmatprep.subr.bf16.mxu1 %v3156_v45  ;;  %1803 = vmatprep.mubr.bf16.mxu0 %v129_v10  ;;  %v3212_v45 = vld [vmem:[#allocation5 + $0x2f8] sm:$0xff]   ;;  %v3233_v10 = vld [vmem:[#allocation5 + $0x320] sm:$0xff]  }
  0x7f   :  { %1843 = vmatprep.mubr.bf16.mxu1 %v131_v11  ;;  %v3234_v11 = vld [vmem:[#allocation5 + $0x3a0] sm:$0xff]  }
  0x80   :  { %2805 = vmatpush3.bf16.msra.mxu0 %v3157_v46  ;;  %v3213_v46 = vld [vmem:[#allocation5 + $0x238] sm:$0xff]  }
  0x81   :  { %2827 = vmatpush3.bf16.msra.mxu1 %v3158_v47  ;;  %2806 = vmatprep.subr.bf16.mxu0 %v3159_v48  ;;  %v3214_v47 = vld [vmem:[#allocation5 + $0x2b8] sm:$0xff]   ;;  %v109_v48 = vld [vmem:[#allocation2 + $0x48] sm:$0xff] }
  0x82   :  { %2828 = vmatprep.subr.bf16.mxu1 %v3160_v49  ;;  %v133_v49 = vpack.c.bf16 %v109_v48, %v109_v48  ;;  %v3263_v48 = vld [vmem:[#allocation5 + $0x460] sm:$0xff]  }
  0x84   :  { %2807 = vmatpush3.bf16.msra.mxu0 %v3161_v50  ;;  %v111_v50 = vld [vmem:[#allocation2 + $0x58] sm:$0xff] }
  0x85   :  { %2829 = vmatpush3.bf16.msra.mxu1 %v3162_v51  ;;  %2808 = vmatprep.subr.bf16.mxu0 %v3163_v52  ;;  %v108_v51 = vld [vmem:[#allocation2 + $0x40] sm:$0xff]  ;;  %v110_v52 = vld [vmem:[#allocation2 + $0x50] sm:$0xff] }
  0x86   :  { %2830 = vmatprep.subr.bf16.mxu1 %v3164_v53  ;;  %v135_v53 = vpack.c.bf16 %v111_v50, %v111_v50  ;;  %v3265_v50 = vld [vmem:[#allocation5 + $0x420] sm:$0xff]  }
  0x88   :  { %2809 = vmatpush3.bf16.msra.mxu0 %v3165_v54  ;;  %v132_v54 = vpack.c.bf16 %v108_v51, %v108_v51  ;;  %v3266_v51 = vld [vmem:[#allocation5 + $0x4a0] sm:$0xff]  }
  0x89   :  { %2831 = vmatpush3.bf16.msra.mxu1 %v3166_v55  ;;  %2810 = vmatprep.subr.bf16.mxu0 %v3167_v56  ;;  %v134_v55 = vpack.c.bf16 %v110_v52, %v110_v52  ;;  %v3215_v56 = vld [vmem:[#allocation5 + $0x340] sm:$0xff]   ;;  %v3267_v52 = vld [vmem:[#allocation5 + $0x468] sm:$0xff]  }
  0x8a   :  { %2832 = vmatprep.subr.bf16.mxu1 %v3168_v57  ;;  %v3216_v57 = vld [vmem:[#allocation5 + $0x3c0] sm:$0xff]  }
  0x8c   :  { %2811 = vmatpush3.bf16.msra.mxu0 %v3169_v58  ;;  %v3217_v58 = vld [vmem:[#allocation5 + $0x300] sm:$0xff]  }
  0x8d   :  { %2833 = vmatpush3.bf16.msra.mxu1 %v3170_v59  ;;  %2812 = vmatprep.subr.bf16.mxu0 %v3171_v60  ;;  %v3218_v59 = vld [vmem:[#allocation5 + $0x380] sm:$0xff]   ;;  %v3219_v60 = vld [vmem:[#allocation5 + $0x348] sm:$0xff]  }
  0x8e   :  { %2834 = vmatprep.subr.bf16.mxu1 %v3172_v61  ;;  %v3220_v61 = vld [vmem:[#allocation5 + $0x3c8] sm:$0xff]  }
  0x90   :  { %2813 = vmatpush3.bf16.msra.mxu0 %v3173_v62  ;;  %v3221_v62 = vld [vmem:[#allocation5 + $0x308] sm:$0xff]  }
  0x91   :  { %2835 = vmatpush3.bf16.msra.mxu1 %v3174_v63  ;;  %2814 = vmatprep.subr.bf16.mxu0 %v3175_v0  ;;  %v3222_v63 = vld [vmem:[#allocation5 + $0x388] sm:$0xff]   ;;  %v3223_v0 = vld [vmem:[#allocation5 + $0x350] sm:$0xff]  }
  0x92   :  { %2836 = vmatprep.subr.bf16.mxu1 %v3176_v1  ;;  %v3224_v1 = vld [vmem:[#allocation5 + $0x3d0] sm:$0xff]  }
  0x94   :  { %2815 = vmatpush3.bf16.msra.mxu0 %v3177_v2  ;;  %v3225_v2 = vld [vmem:[#allocation5 + $0x310] sm:$0xff]  }
  0x95   :  { %2837 = vmatpush3.bf16.msra.mxu1 %v3178_v3  ;;  %2816 = vmatprep.subr.bf16.mxu0 %v3179_v4  ;;  %v3226_v3 = vld [vmem:[#allocation5 + $0x390] sm:$0xff]   ;;  %v3227_v4 = vld [vmem:[#allocation5 + $0x358] sm:$0xff]  }
  0x96   :  { %2838 = vmatprep.subr.bf16.mxu1 %v3180_v5  ;;  %v3228_v5 = vld [vmem:[#allocation5 + $0x3d8] sm:$0xff]  }
  0x98   :  { %2817 = vmatpush3.bf16.msra.mxu0 %v3181_v6  ;;  %v3229_v6 = vld [vmem:[#allocation5 + $0x318] sm:$0xff]  }
  0x99   :  { %2839 = vmatpush3.bf16.msra.mxu1 %v3182_v7  ;;  %2846 = vmatprep.subr.bf16.mxu0 %v3183_v16  ;;  %v3230_v7 = vld [vmem:[#allocation5 + $0x398] sm:$0xff]   ;;  %v3239_v16 = vld [vmem:[#allocation5 + $0x370] sm:$0xff]  }
  0x9a   :  { %2868 = vmatprep.subr.bf16.mxu1 %v3184_v17  ;;  %v3240_v17 = vld [vmem:[#allocation5 + $0x3f0] sm:$0xff]  }
  0x9b   :  { %1804 = vmatmul.mubr.bf16.vlgmr.msra.gmra.mrb[4].mxu0 %v128_v14  ;;  %v3237_v14 = vld [vmem:[#allocation5 + $0x328] sm:$0xff]  }
  0x9c   :  { %1844 = vmatmul.mubr.bf16.vlgmr.msra.gmra.mrb[4].mxu1 %v130_v15  ;;  %2847 = vmatpush3.bf16.msra.mxu0 %v3185_v18  ;;  %v3238_v15 = vld [vmem:[#allocation5 + $0x3a8] sm:$0xff]   ;;  %v3241_v18 = vld [vmem:[#allocation5 + $0x330] sm:$0xff]  }
  0x9d   :  { %2869 = vmatpush3.bf16.msra.mxu1 %v3186_v19  ;;  %2848 = vmatprep.subr.bf16.mxu0 %v3187_v20  ;;  %v3242_v19 = vld [vmem:[#allocation5 + $0x3b0] sm:$0xff]   ;;  %v3243_v20 = vld [vmem:[#allocation5 + $0x378] sm:$0xff]  }
  0x9e   :  { %2870 = vmatprep.subr.bf16.mxu1 %v3188_v21  ;;  %1883 = vmatprep.mubr.bf16.mxu0 %v133_v49  ;;  %v3244_v21 = vld [vmem:[#allocation5 + $0x3f8] sm:$0xff]   ;;  %v3264_v49 = vld [vmem:[#allocation5 + $0x4e0] sm:$0xff]  }
  0x9f   :  { %1923 = vmatprep.mubr.bf16.mxu1 %v135_v53  ;;  %v3268_v53 = vld [vmem:[#allocation5 + $0x4e8] sm:$0xff]  }
  0xa0   :  { %2849 = vmatpush3.bf16.msra.mxu0 %v3189_v22  ;;  %v3245_v22 = vld [vmem:[#allocation5 + $0x338] sm:$0xff]  }
  0xa1   :  { %2871 = vmatpush3.bf16.msra.mxu1 %v3190_v23  ;;  %2850 = vmatprep.subr.bf16.mxu0 %v3191_v24  ;;  %v3246_v23 = vld [vmem:[#allocation5 + $0x3b8] sm:$0xff]   ;;  %v113_v24 = vld [vmem:[#allocation2 + $0x68] sm:$0xff] }
  0xa2   :  { %2872 = vmatprep.subr.bf16.mxu1 %v3192_v25  ;;  %v115_v25 = vld [vmem:[#allocation2 + $0x78] sm:$0xff] }
  0xa4   :  { %2851 = vmatpush3.bf16.msra.mxu0 %v3193_v26  ;;  %v112_v26 = vld [vmem:[#allocation2 + $0x60] sm:$0xff] }
  0xa5   :  { %2873 = vmatpush3.bf16.msra.mxu1 %v3194_v27  ;;  %2852 = vmatprep.subr.bf16.mxu0 %v3195_v28  ;;  %v137_v27 = vpack.c.bf16 %v113_v24, %v113_v24  ;;  %v139_v28 = vpack.c.bf16 %v115_v25, %v115_v25  ;;  %v3295_v24 = vld [vmem:[#allocation5 + $0x560] sm:$0xff]  }
  0xa6   :  { %2874 = vmatprep.subr.bf16.mxu1 %v3196_v29  ;;  %v136_v29 = vpack.c.bf16 %v112_v26, %v112_v26  ;;  %v3296_v25 = vld [vmem:[#allocation5 + $0x5e0] sm:$0xff]  }
  0xa7   :  { %v3297_v26 = vld [vmem:[#allocation5 + $0x520] sm:$0xff]  }
  0xa8   :  { %2853 = vmatpush3.bf16.msra.mxu0 %v3197_v30  ;;  %v114_v30 = vld [vmem:[#allocation2 + $0x70] sm:$0xff] }
  0xa9   :  { %2875 = vmatpush3.bf16.msra.mxu1 %v3198_v31  ;;  %2854 = vmatprep.subr.bf16.mxu0 %v3199_v32  ;;  %v138_v31 = vpack.c.bf16 %v114_v30, %v114_v30  ;;  %v3247_v32 = vld [vmem:[#allocation5 + $0x440] sm:$0xff]   ;;  %v3301_v30 = vld [vmem:[#allocation5 + $0x528] sm:$0xff]  }
  0xaa   :  { %2876 = vmatprep.subr.bf16.mxu1 %v3200_v33  ;;  %v3248_v33 = vld [vmem:[#allocation5 + $0x4c0] sm:$0xff]  }
  0xac   :  { %2855 = vmatpush3.bf16.msra.mxu0 %v3201_v34  ;;  %v3249_v34 = vld [vmem:[#allocation5 + $0x400] sm:$0xff]  }
  0xad   :  { %2877 = vmatpush3.bf16.msra.mxu1 %v3202_v35  ;;  %2856 = vmatprep.subr.bf16.mxu0 %v3203_v36  ;;  %v3250_v35 = vld [vmem:[#allocation5 + $0x480] sm:$0xff]   ;;  %v3251_v36 = vld [vmem:[#allocation5 + $0x448] sm:$0xff]  }
  0xae   :  { %2878 = vmatprep.subr.bf16.mxu1 %v3204_v37  ;;  %v3252_v37 = vld [vmem:[#allocation5 + $0x4c8] sm:$0xff]  }
  0xb0   :  { %2857 = vmatpush3.bf16.msra.mxu0 %v3205_v38  ;;  %v3253_v38 = vld [vmem:[#allocation5 + $0x408] sm:$0xff]  }
  0xb1   :  { %2879 = vmatpush3.bf16.msra.mxu1 %v3206_v39  ;;  %2858 = vmatprep.subr.bf16.mxu0 %v3207_v40  ;;  %v3254_v39 = vld [vmem:[#allocation5 + $0x488] sm:$0xff]   ;;  %v3255_v40 = vld [vmem:[#allocation5 + $0x450] sm:$0xff]  }
  0xb2   :  { %2880 = vmatprep.subr.bf16.mxu1 %v3208_v41  ;;  %v3256_v41 = vld [vmem:[#allocation5 + $0x4d0] sm:$0xff]  }
  0xb4   :  { %2859 = vmatpush3.bf16.msra.mxu0 %v3209_v42  ;;  %v3257_v42 = vld [vmem:[#allocation5 + $0x410] sm:$0xff]  }
  0xb5   :  { %2881 = vmatpush3.bf16.msra.mxu1 %v3210_v43  ;;  %2860 = vmatprep.subr.bf16.mxu0 %v3211_v44  ;;  %v3258_v43 = vld [vmem:[#allocation5 + $0x490] sm:$0xff]   ;;  %v3259_v44 = vld [vmem:[#allocation5 + $0x458] sm:$0xff]  }
  0xb6   :  { %2882 = vmatprep.subr.bf16.mxu1 %v3212_v45  ;;  %v3260_v45 = vld [vmem:[#allocation5 + $0x4d8] sm:$0xff]  }
  0xb8   :  { %2861 = vmatpush3.bf16.msra.mxu0 %v3213_v46  ;;  %v3261_v46 = vld [vmem:[#allocation5 + $0x418] sm:$0xff]  }
  0xb9   :  { %2883 = vmatpush3.bf16.msra.mxu1 %v3214_v47  ;;  %2890 = vmatprep.subr.bf16.mxu0 %v3215_v56  ;;  %v3262_v47 = vld [vmem:[#allocation5 + $0x498] sm:$0xff]   ;;  %v3271_v56 = vld [vmem:[#allocation5 + $0x470] sm:$0xff]  }
  0xba   :  { %2912 = vmatprep.subr.bf16.mxu1 %v3216_v57  ;;  %v3272_v57 = vld [vmem:[#allocation5 + $0x4f0] sm:$0xff]  }
  0xbb   :  { %1884 = vmatmul.mubr.bf16.vlgmr.msra.gmra.mrb[8].mxu0 %v132_v54  ;;  %v3269_v54 = vld [vmem:[#allocation5 + $0x428] sm:$0xff]  }
  0xbc   :  { %1924 = vmatmul.mubr.bf16.vlgmr.msra.gmra.mrb[8].mxu1 %v134_v55  ;;  %2891 = vmatpush3.bf16.msra.mxu0 %v3217_v58  ;;  %v3270_v55 = vld [vmem:[#allocation5 + $0x4a8] sm:$0xff]   ;;  %v3273_v58 = vld [vmem:[#allocation5 + $0x430] sm:$0xff]  }
  0xbd   :  { %2913 = vmatpush3.bf16.msra.mxu1 %v3218_v59  ;;  %2892 = vmatprep.subr.bf16.mxu0 %v3219_v60  ;;  %v3274_v59 = vld [vmem:[#allocation5 + $0x4b0] sm:$0xff]   ;;  %v3275_v60 = vld [vmem:[#allocation5 + $0x478] sm:$0xff]  }
  0xbe   :  { %2914 = vmatprep.subr.bf16.mxu1 %v3220_v61  ;;  %1963 = vmatprep.mubr.bf16.mxu0 %v137_v27  ;;  %v3276_v61 = vld [vmem:[#allocation5 + $0x4f8] sm:$0xff]   ;;  %v3298_v27 = vld [vmem:[#allocation5 + $0x5a0] sm:$0xff]  }
  0xbf   :  { %2003 = vmatprep.mubr.bf16.mxu1 %v139_v28  ;;  %v3299_v28 = vld [vmem:[#allocation5 + $0x568] sm:$0xff]  }
  0xc0   :  { %2893 = vmatpush3.bf16.msra.mxu0 %v3221_v62  ;;  %v3277_v62 = vld [vmem:[#allocation5 + $0x438] sm:$0xff]  }
  0xc1   :  { %2915 = vmatpush3.bf16.msra.mxu1 %v3222_v63  ;;  %2894 = vmatprep.subr.bf16.mxu0 %v3223_v0  ;;  %v3278_v63 = vld [vmem:[#allocation5 + $0x4b8] sm:$0xff]   ;;  %v117_v0 = vld [vmem:[#allocation2 + $0x88] sm:$0xff] }
  0xc2   :  { %2916 = vmatprep.subr.bf16.mxu1 %v3224_v1  ;;  %v119_v1 = vld [vmem:[#allocation2 + $0x98] sm:$0xff] }
  0xc4   :  { %2895 = vmatpush3.bf16.msra.mxu0 %v3225_v2  ;;  %v141_v2 = vpack.c.bf16 %v117_v0, %v117_v0  ;;  %v3313_v0 = vld [vmem:[#allocation7 + $0x10] sm:$0xff]  }
  0xc5   :  { %2917 = vmatpush3.bf16.msra.mxu1 %v3226_v3  ;;  %2896 = vmatprep.subr.bf16.mxu0 %v3227_v4  ;;  %v143_v3 = vpack.c.bf16 %v119_v1, %v119_v1  ;;  %v116_v4 = vld [vmem:[#allocation2 + $0x80] sm:$0xff]  ;;  %v3314_v1 = vld [vmem:[#allocation7 + $0x18] sm:$0xff]  }
  0xc6   :  { %2918 = vmatprep.subr.bf16.mxu1 %v3228_v5  ;;  %v118_v5 = vld [vmem:[#allocation2 + $0x90] sm:$0xff] }
  0xc8   :  { %2897 = vmatpush3.bf16.msra.mxu0 %v3229_v6  ;;  %v140_v6 = vpack.c.bf16 %v116_v4, %v116_v4 }
  0xc9   :  { %2919 = vmatpush3.bf16.msra.mxu1 %v3230_v7  ;;  %2898 = vmatprep.subr.bf16.mxu0 %v3231_v8  ;;  %v142_v7 = vpack.c.bf16 %v118_v5, %v118_v5  ;;  %v3279_v8 = vld [vmem:[#allocation5 + $0x540] sm:$0xff]  }
  0xca   :  { %2920 = vmatprep.subr.bf16.mxu1 %v3232_v9  ;;  %v3280_v9 = vld [vmem:[#allocation5 + $0x5c0] sm:$0xff]  }
  0xcc   :  { %2899 = vmatpush3.bf16.msra.mxu0 %v3233_v10  ;;  %v3281_v10 = vld [vmem:[#allocation5 + $0x500] sm:$0xff]  }
  0xcd   :  { %2921 = vmatpush3.bf16.msra.mxu1 %v3234_v11  ;;  %2900 = vmatprep.subr.bf16.mxu0 %v3235_v12  ;;  %v3282_v11 = vld [vmem:[#allocation5 + $0x580] sm:$0xff]   ;;  %v3283_v12 = vld [vmem:[#allocation5 + $0x548] sm:$0xff]  }
  0xce   :  { %2922 = vmatprep.subr.bf16.mxu1 %v3236_v13  ;;  %v3284_v13 = vld [vmem:[#allocation5 + $0x5c8] sm:$0xff]  }
  0xd0   :  { %2901 = vmatpush3.bf16.msra.mxu0 %v3237_v14  ;;  %v3285_v14 = vld [vmem:[#allocation5 + $0x508] sm:$0xff]  }
  0xd1   :  { %2923 = vmatpush3.bf16.msra.mxu1 %v3238_v15  ;;  %2902 = vmatprep.subr.bf16.mxu0 %v3239_v16  ;;  %v3286_v15 = vld [vmem:[#allocation5 + $0x588] sm:$0xff]   ;;  %v3287_v16 = vld [vmem:[#allocation5 + $0x550] sm:$0xff]  }
  0xd2   :  { %2924 = vmatprep.subr.bf16.mxu1 %v3240_v17  ;;  %v3288_v17 = vld [vmem:[#allocation5 + $0x5d0] sm:$0xff]  }
  0xd4   :  { %2903 = vmatpush3.bf16.msra.mxu0 %v3241_v18  ;;  %v3289_v18 = vld [vmem:[#allocation5 + $0x510] sm:$0xff]  }
  0xd5   :  { %2925 = vmatpush3.bf16.msra.mxu1 %v3242_v19  ;;  %2904 = vmatprep.subr.bf16.mxu0 %v3243_v20  ;;  %v3290_v19 = vld [vmem:[#allocation5 + $0x590] sm:$0xff]   ;;  %v3291_v20 = vld [vmem:[#allocation5 + $0x558] sm:$0xff]  }
  0xd6   :  { %2926 = vmatprep.subr.bf16.mxu1 %v3244_v21  ;;  %v3292_v21 = vld [vmem:[#allocation5 + $0x5d8] sm:$0xff]  }
  0xd8   :  { %2905 = vmatpush3.bf16.msra.mxu0 %v3245_v22  ;;  %v3293_v22 = vld [vmem:[#allocation5 + $0x518] sm:$0xff]  }
  0xd9   :  { %2927 = vmatpush3.bf16.msra.mxu1 %v3246_v23  ;;  %2934 = vmatprep.subr.bf16.mxu0 %v3247_v32  ;;  %v3294_v23 = vld [vmem:[#allocation5 + $0x598] sm:$0xff]   ;;  %v3303_v32 = vld [vmem:[#allocation5 + $0x570] sm:$0xff]  }
  0xda   :  { %2956 = vmatprep.subr.bf16.mxu1 %v3248_v33  ;;  %v3304_v33 = vld [vmem:[#allocation5 + $0x5f0] sm:$0xff]  }
  0xdb   :  { %1964 = vmatmul.mubr.bf16.vlgmr.msra.gmra.mrb[12].mxu0 %v136_v29  ;;  %v3300_v29 = vld [vmem:[#allocation5 + $0x5e8] sm:$0xff]  }
  0xdc   :  { %2004 = vmatmul.mubr.bf16.vlgmr.msra.gmra.mrb[12].mxu1 %v138_v31  ;;  %2935 = vmatpush3.bf16.msra.mxu0 %v3249_v34  ;;  %v3302_v31 = vld [vmem:[#allocation5 + $0x5a8] sm:$0xff]   ;;  %v3305_v34 = vld [vmem:[#allocation5 + $0x530] sm:$0xff]  }
  0xdd   :  { %2957 = vmatpush3.bf16.msra.mxu1 %v3250_v35  ;;  %2936 = vmatprep.subr.bf16.mxu0 %v3251_v36  ;;  %v3306_v35 = vld [vmem:[#allocation5 + $0x5b0] sm:$0xff]   ;;  %v3307_v36 = vld [vmem:[#allocation5 + $0x578] sm:$0xff]  }
  0xde   :  { %2958 = vmatprep.subr.bf16.mxu1 %v3252_v37  ;;  %2043 = vmatprep.mubr.bf16.mxu0 %v141_v2  ;;  %v3308_v37 = vld [vmem:[#allocation5 + $0x5f8] sm:$0xff]   ;;  %v3315_v2 = vld [vmem:[#allocation7 + $0x20] sm:$0xff]  }
  0xdf   :  { %2083 = vmatprep.mubr.bf16.mxu1 %v143_v3 }
  0xe0   :  { %2937 = vmatpush3.bf16.msra.mxu0 %v3253_v38  ;;  %v3309_v38 = vld [vmem:[#allocation5 + $0x538] sm:$0xff]  }
  0xe1   :  { %2959 = vmatpush3.bf16.msra.mxu1 %v3254_v39  ;;  %2938 = vmatprep.subr.bf16.mxu0 %v3255_v40  ;;  %v3310_v39 = vld [vmem:[#allocation5 + $0x5b8] sm:$0xff]   ;;  %v121_v40 = vld [vmem:[#allocation2 + $0xa8] sm:$0xff] }
  0xe2   :  { %2960 = vmatprep.subr.bf16.mxu1 %v3256_v41  ;;  %v145_v41 = vpack.c.bf16 %v121_v40, %v121_v40 }
  0xe4   :  { %2939 = vmatpush3.bf16.msra.mxu0 %v3257_v42  ;;  %v123_v42 = vld [vmem:[#allocation2 + $0xb8] sm:$0xff] }
  0xe5   :  { %2961 = vmatpush3.bf16.msra.mxu1 %v3258_v43  ;;  %2940 = vmatprep.subr.bf16.mxu0 %v3259_v44  ;;  %v120_v43 = vld [vmem:[#allocation2 + $0xa0] sm:$0xff]  ;;  %v122_v44 = vld [vmem:[#allocation2 + $0xb0] sm:$0xff] }
  0xe6   :  { %2962 = vmatprep.subr.bf16.mxu1 %v3260_v45  ;;  %v147_v45 = vpack.c.bf16 %v123_v42, %v123_v42 }
  0xe8   :  { %2941 = vmatpush3.bf16.msra.mxu0 %v3261_v46  ;;  %v144_v46 = vpack.c.bf16 %v120_v43, %v120_v43 }
  0xe9   :  { %2963 = vmatpush3.bf16.msra.mxu1 %v3262_v47  ;;  %2942 = vmatprep.subr.bf16.mxu0 %v3263_v48  ;;  %v146_v47 = vpack.c.bf16 %v122_v44, %v122_v44 }
  0xea   :  { %2964 = vmatprep.subr.bf16.mxu1 %v3264_v49 }
  0xec   :  { %2943 = vmatpush3.bf16.msra.mxu0 %v3265_v50  ;;  %v2538_v50 = vld [vmem:[%s3667_s2] ss:$0 sm:$0xff] }
  0xed   :  { %2965 = vmatpush3.bf16.msra.mxu1 %v3266_v51  ;;  %2944 = vmatprep.subr.bf16.mxu0 %v3267_v52 }
  0xee   :  { %2966 = vmatprep.subr.bf16.mxu1 %v3268_v53 }
  0xf0   :  { %2945 = vmatpush3.bf16.msra.mxu0 %v3269_v54 }
  0xf1   :  { %2967 = vmatpush3.bf16.msra.mxu1 %v3270_v55  ;;  %2946 = vmatprep.subr.bf16.mxu0 %v3271_v56 }
  0xf2   :  { %2968 = vmatprep.subr.bf16.mxu1 %v3272_v57 }
  0xf4   :  { %2947 = vmatpush3.bf16.msra.mxu0 %v3273_v58 }
  0xf5   :  { %2969 = vmatpush3.bf16.msra.mxu1 %v3274_v59  ;;  %2948 = vmatprep.subr.bf16.mxu0 %v3275_v60 }
  0xf6   :  { %2970 = vmatprep.subr.bf16.mxu1 %v3276_v61  ;;  %v3311_v61 = vld [vmem:[#allocation7] sm:$0xff]  }
  0xf8   :  { %2949 = vmatpush3.bf16.msra.mxu0 %v3277_v62  ;;  %v3486_v62 = vmov 0.0  }
  0xf9   :  { %2971 = vmatpush3.bf16.msra.mxu1 %v3278_v63  ;;  %2978 = vmatprep.subr.bf16.mxu0 %v3279_v8  ;;  %v3312_v63 = vld [vmem:[#allocation7 + $0x8] sm:$0xff]  }
  0xfa   :  { %3000 = vmatprep.subr.bf16.mxu1 %v3280_v9 }
  0xfb   :  { %2044 = vmatmul.mubr.bf16.vlgmr.msra.gmra.mrb[16].mxu0 %v140_v6 }
  0xfc   :  { %2084 = vmatmul.mubr.bf16.vlgmr.msra.gmra.mrb[16].mxu1 %v142_v7  ;;  %2979 = vmatpush3.bf16.msra.mxu0 %v3281_v10 }
  0xfd   :  { %3001 = vmatpush3.bf16.msra.mxu1 %v3282_v11  ;;  %2980 = vmatprep.subr.bf16.mxu0 %v3283_v12 }
  0xfe   :  { %3002 = vmatprep.subr.bf16.mxu1 %v3284_v13  ;;  %2123 = vmatprep.mubr.bf16.mxu0 %v145_v41 }
  0xff   :  { %2163 = vmatprep.mubr.bf16.mxu1 %v147_v45 }
 0x100   :  { %2981 = vmatpush3.bf16.msra.mxu0 %v3285_v14  ;;  %v3316_v14 = vld [vmem:[#allocation7 + $0x28] sm:$0xff]  }
 0x101   :  { %3003 = vmatpush3.bf16.msra.mxu1 %v3286_v15  ;;  %2982 = vmatprep.subr.bf16.mxu0 %v3287_v16  ;;  %v3317_v16 = vld [vmem:[#allocation7 + $0x30] sm:$0xff]  }
 0x102   :  { %3004 = vmatprep.subr.bf16.mxu1 %v3288_v17  ;;  %v3318_v17 = vld [vmem:[#allocation7 + $0x38] sm:$0xff]  }
 0x104   :  { %2983 = vmatpush3.bf16.msra.mxu0 %v3289_v18  ;;  %v3319_v18 = vld [vmem:[#allocation8] sm:$0xff]  }
 0x105   :  { %3005 = vmatpush3.bf16.msra.mxu1 %v3290_v19  ;;  %2984 = vmatprep.subr.bf16.mxu0 %v3291_v20  ;;  %v3320_v19 = vld [vmem:[#allocation8 + $0x8] sm:$0xff]   ;;  %v3321_v20 = vld [vmem:[#allocation8 + $0x10] sm:$0xff]  }
 0x106   :  { %3006 = vmatprep.subr.bf16.mxu1 %v3292_v21  ;;  %v3322_v21 = vld [vmem:[#allocation8 + $0x18] sm:$0xff]  }
 0x108   :  { %2985 = vmatpush3.bf16.msra.mxu0 %v3293_v22  ;;  %v3323_v22 = vld [vmem:[#allocation8 + $0x20] sm:$0xff]  }
 0x109   :  { %3007 = vmatpush3.bf16.msra.mxu1 %v3294_v23  ;;  %2986 = vmatprep.subr.bf16.mxu0 %v3295_v24 }
 0x10a   :  { %3008 = vmatprep.subr.bf16.mxu1 %v3296_v25 }
 0x10c   :  { %2987 = vmatpush3.bf16.msra.mxu0 %v3297_v26 }
 0x10d   :  { %3009 = vmatpush3.bf16.msra.mxu1 %v3298_v27  ;;  %2988 = vmatprep.subr.bf16.mxu0 %v3299_v28 }
 0x10e   :  { %3010 = vmatprep.subr.bf16.mxu1 %v3300_v29  ;;  %v3324_v29 = vld [vmem:[#allocation8 + $0x28] sm:$0xff]  }
 0x110   :  { %2989 = vmatpush3.bf16.msra.mxu0 %v3301_v30 }
 0x111   :  { %3011 = vmatpush3.bf16.msra.mxu1 %v3302_v31  ;;  %2990 = vmatprep.subr.bf16.mxu0 %v3303_v32 }
 0x112   :  { %3012 = vmatprep.subr.bf16.mxu1 %v3304_v33 }
 0x114   :  { %2991 = vmatpush3.bf16.msra.mxu0 %v3305_v34 }
 0x115   :  { %3013 = vmatpush3.bf16.msra.mxu1 %v3306_v35  ;;  %2992 = vmatprep.subr.bf16.mxu0 %v3307_v36 }
 0x116   :  { %3014 = vmatprep.subr.bf16.mxu1 %v3308_v37 }
 0x118   :  { %2993 = vmatpush3.bf16.msra.mxu0 %v3309_v38 }
 0x119   :  { %3015 = vmatpush3.bf16.msra.mxu1 %v3310_v39  ;;  %3049 = vmatprep.subr.bf16.mxu0 %v3486_v62 }
 0x11a   :  { %3069 = vmatprep.subr.bf16.mxu1 %v3486_v62 }
 0x11b   :  { %2124 = vmatmul.mubr.bf16.vlgmr.msra.gmra.mrb[20].mxu0 %v144_v46 }
 0x11c   :  { %2164 = vmatmul.mubr.bf16.vlgmr.msra.gmra.mrb[20].mxu1 %v146_v47  ;;  %3050 = vmatpush3.bf16.msra.mxu0 %v3311_v61 }
 0x11d   :  { %3051 = vmatprep.subr.bf16.mxu0 %v3486_v62  ;;  %3065 = vmatprep.mubr.msk.bf16.mxu0 %vm3487_vm0, %v3486_v62 }
 0x11e   :  { %3085 = vmatprep.mubr.msk.bf16.mxu1 %vm3487_vm0, %v3486_v62  ;;  %3070 = vmatpush3.bf16.msra.mxu1 %v3319_v18  ;;  %v3332_v18 = vld [vmem:[#allocation10 + $0x28] sm:$0xff]  }
 0x11f   :  { %3071 = vmatprep.subr.bf16.mxu1 %v3486_v62 }
 0x120   :  { %3052 = vmatpush3.bf16.msra.mxu0 %v3312_v63 }
 0x121   :  { %3053 = vmatprep.subr.bf16.mxu0 %v3486_v62 }
 0x122   :  { %3072 = vmatpush3.bf16.msra.mxu1 %v3320_v19  ;;  %v2731_v19 = vld [vmem:[%s3669_s4] ss:$0 sm:$0xff] }
 0x123   :  { %3073 = vmatprep.subr.bf16.mxu1 %v3486_v62 }
 0x124   :  { %3054 = vmatpush3.bf16.msra.mxu0 %v3313_v0 }
 0x125   :  { %3055 = vmatprep.subr.bf16.mxu0 %v3486_v62 }
 0x126   :  { %3074 = vmatpush3.bf16.msra.mxu1 %v3321_v20 }
 0x127   :  { %3075 = vmatprep.subr.bf16.mxu1 %v3486_v62 }
 0x128   :  { %3056 = vmatpush3.bf16.msra.mxu0 %v3314_v1 }
 0x129   :  { %3057 = vmatprep.subr.bf16.mxu0 %v3486_v62 }
 0x12a   :  { %3076 = vmatpush3.bf16.msra.mxu1 %v3322_v21 }
 0x12b   :  { %3077 = vmatprep.subr.bf16.mxu1 %v3486_v62 }
 0x12c   :  { %3058 = vmatpush3.bf16.msra.mxu0 %v3315_v2 }
 0x12d   :  { %3059 = vmatprep.subr.bf16.mxu0 %v3486_v62 }
 0x12e   :  { %3078 = vmatpush3.bf16.msra.mxu1 %v3323_v22 }
 0x12f   :  { %3079 = vmatprep.subr.bf16.mxu1 %v3486_v62 }
 0x130   :  { %3060 = vmatpush3.bf16.msra.mxu0 %v3316_v14  ;;  %v3328_v14 = vld [vmem:[#allocation10 + $0x8] sm:$0xff]  }
 0x131   :  { %3061 = vmatprep.subr.bf16.mxu0 %v3486_v62 }
 0x132   :  { %3080 = vmatpush3.bf16.msra.mxu1 %v3324_v29  ;;  %v2740_v29 = vld [vmem:[%s3671_s6] ss:$0 sm:$0xff]  ;;  %s3488_s6 = smov [#allocation11]  }
 0x133   :  { %3081 = vmatprep.subr.bf16.mxu1 %v3486_v62  ;;  %s2527_s11 = sshll.u32 %s3488_s6, 4  ;;  %s2528_s11 = int_to_ptr.vmem [resolvable:$true] %s2527_s11 }
 0x134   :  { %3062 = vmatpush3.bf16.msra.mxu0 %v3317_v16  ;;  %v3330_v16 = vld [vmem:[#allocation10 + $0x18] sm:$0xff]   ;;  %p3454_p13 = scmp.lt.s32.totalorder %s2528_s11, %s2528_s11 }
 0x135   :  { %3063 = vmatprep.subr.bf16.mxu0 %v3486_v62 }
 0x138   :  { %3064 = vmatpush3.bf16.msra.mxu0 %v3318_v17  ;;  %v3331_v17 = vld [vmem:[#allocation10 + $0x20] sm:$0xff]  }
 0x139   :  { %3089 = vmatprep.subr.bf16.mxu0 %v3486_v62 }
 0x14e   :  { %v2774_v48 = vpop.f32.mrb[0].mxu0 }
 0x14f   :  { %v2796_v49 = vpop.f32.mrb[0].mxu1  ;;  %v2775_v51 = vpop.f32.mrb[1].mxu0 }
 0x150   :  { %v2797_v52 = vpop.f32.mrb[1].mxu1  ;;  %v2776_v53 = vadd.f32 %v2775_v51, %v2774_v48  ;;  %v2777_v55 = vpop.f32.mrb[2].mxu0 }
 0x151   :  { %v2798_v54 = vadd.f32 %v2797_v52, %v2796_v49  ;;  %v2799_v56 = vpop.f32.mrb[2].mxu1  ;;  %v2778_v57 = vpop.f32.mrb[3].mxu0 }
 0x152   :  { %v2800_v58 = vpop.f32.mrb[3].mxu1  ;;  %v1726_v59 = vadd.f32 %v2776_v53, %v2538_v50 }
 0x154   :  { %v1766_v60 = vadd.f32 %v2798_v54, %v1726_v59 }
 0x16e   :  { %v2818_v3 = vpop.f32.mrb[4].mxu0 }
 0x16f   :  { %v2840_v4 = vpop.f32.mrb[4].mxu1  ;;  %v2819_v5 = vpop.f32.mrb[5].mxu0 }
 0x170   :  { %v2820_v6 = vadd.f32 %v2819_v5, %v2818_v3  ;;  %v2841_v7 = vpop.f32.mrb[5].mxu1  ;;  %v2821_v8 = vpop.f32.mrb[6].mxu0 }
 0x171   :  { %v2842_v9 = vadd.f32 %v2841_v7, %v2840_v4  ;;  %v2843_v10 = vpop.f32.mrb[6].mxu1  ;;  %v2822_v11 = vpop.f32.mrb[7].mxu0 }
 0x172   :  { %v1806_v12 = vadd.f32 %v2820_v6, %v1766_v60  ;;  %v2844_v13 = vpop.f32.mrb[7].mxu1  ;;  %v3325_v11 = vld [vmem:[#allocation8 + $0x30] sm:$0xff]  }
 0x173   :  { %3082 = vmatpush3.bf16.msra.mxu1 %v3325_v11  ;;  %v3327_v13 = vld [vmem:[#allocation10] sm:$0xff]  }
 0x174   :  { %v1846_v15 = vadd.f32 %v2842_v9, %v1806_v12  ;;  %3083 = vmatprep.subr.bf16.mxu1 %v3486_v62  ;;  %v3326_v12 = vld [vmem:[#allocation8 + $0x38] sm:$0xff]  }
 0x177   :  { %3084 = vmatpush3.bf16.msra.mxu1 %v3326_v12 }
 0x18e   :  { %v2862_v23 = vpop.f32.mrb[8].mxu0 }
 0x18f   :  { %v2884_v24 = vpop.f32.mrb[8].mxu1  ;;  %v2863_v25 = vpop.f32.mrb[9].mxu0 }
 0x190   :  { %v2864_v26 = vadd.f32 %v2863_v25, %v2862_v23  ;;  %v2885_v27 = vpop.f32.mrb[9].mxu1  ;;  %v2865_v28 = vpop.f32.mrb[10].mxu0 }
 0x191   :  { %v2886_v30 = vadd.f32 %v2885_v27, %v2884_v24  ;;  %v2887_v31 = vpop.f32.mrb[10].mxu1  ;;  %v2866_v32 = vpop.f32.mrb[11].mxu0  ;;  %v3333_v27 = vld [vmem:[#allocation10 + $0x30] sm:$0xff]   ;;  %v3334_v28 = vld [vmem:[#allocation10 + $0x38] sm:$0xff]  }
 0x192   :  { %v1886_v33 = vadd.f32 %v2864_v26, %v1846_v15  ;;  %v2888_v34 = vpop.f32.mrb[11].mxu1  ;;  %v3329_v15 = vld [vmem:[#allocation10 + $0x10] sm:$0xff]  }
 0x194   :  { %v1926_v35 = vadd.f32 %v2886_v30, %v1886_v33 }
 0x1ae   :  { %v2906_v36 = vpop.f32.mrb[12].mxu0 }
 0x1af   :  { %v2928_v37 = vpop.f32.mrb[12].mxu1  ;;  %v2907_v38 = vpop.f32.mrb[13].mxu0 }
 0x1b0   :  { %v2929_v39 = vpop.f32.mrb[13].mxu1  ;;  %v2908_v40 = vadd.f32 %v2907_v38, %v2906_v36  ;;  %v2909_v42 = vpop.f32.mrb[14].mxu0 }
 0x1b1   :  { %v2930_v41 = vadd.f32 %v2929_v39, %v2928_v37  ;;  %v2931_v43 = vpop.f32.mrb[14].mxu1  ;;  %v2910_v44 = vpop.f32.mrb[15].mxu0  ;;  %v2749_v37 = vld [vmem:[%s3673_s8] ss:$0 sm:$0xff]  ;;  %s3449_s8 = scalar_lea.vmem %s2528_s11, 64 }
 0x1b2   :  { %v2932_v45 = vpop.f32.mrb[15].mxu1  ;;  %v1966_v46 = vadd.f32 %v2908_v40, %v1926_v35  ;;  %p3450_p12 = scmp.ne.s32.totalorder %s2528_s11, %s3449_s8  ;;  %p3455_p0 = scmp.lt.s32.totalorder %s3449_s8, %s3449_s8 }
 0x1b4   :  { %v2006_v47 = vadd.f32 %v2930_v41, %v1966_v46  ;;  %p3456_p1 = por %p3455_p0, %p3454_p13 }
 0x1b6   :  { %p3457_p2 = pnand %p3456_p1, %p3450_p12 }
 0x1ce   :  { %v2950_v48 = vpop.f32.mrb[16].mxu0 }
 0x1cf   :  { %v2972_v49 = vpop.f32.mrb[16].mxu1  ;;  %v2951_v50 = vpop.f32.mrb[17].mxu0 }
 0x1d0   :  { %v2952_v51 = vadd.f32 %v2951_v50, %v2950_v48  ;;  %v2973_v52 = vpop.f32.mrb[17].mxu1  ;;  %v2953_v53 = vpop.f32.mrb[18].mxu0 }
 0x1d1   :  { %v2974_v54 = vadd.f32 %v2973_v52, %v2972_v49  ;;  %v2975_v55 = vpop.f32.mrb[18].mxu1  ;;  %v2954_v56 = vpop.f32.mrb[19].mxu0 }
 0x1d2   :  { %v2046_v57 = vadd.f32 %v2952_v51, %v2006_v47  ;;  %v2976_v58 = vpop.f32.mrb[19].mxu1 }
 0x1d4   :  { %v2086_v59 = vadd.f32 %v2974_v54, %v2046_v57 }
 0x1ee   :  { %v2994_v60 = vpop.f32.mrb[20].mxu0 }
 0x1ef   :  { %v3016_v61 = vpop.f32.mrb[20].mxu1  ;;  %v2995_v63 = vpop.f32.mrb[21].mxu0 }
 0x1f0   :  { %v2996_v0 = vadd.f32 %v2995_v63, %v2994_v60  ;;  %v3017_v1 = vpop.f32.mrb[21].mxu1  ;;  %v2997_v2 = vpop.f32.mrb[22].mxu0 }
 0x1f1   :  { %v3018_v3 = vadd.f32 %v3017_v1, %v3016_v61  ;;  %v3019_v4 = vpop.f32.mrb[22].mxu1  ;;  %v2998_v5 = vpop.f32.mrb[23].mxu0 }
 0x1f2   :  { %v2126_v6 = vadd.f32 %v2996_v0, %v2086_v59  ;;  %v3020_v7 = vpop.f32.mrb[23].mxu1 }
 0x1f4   :  { %v2166_v8 = vadd.f32 %v3018_v3, %v2126_v6 }
 0x1f6   :  { %v2171_v9 = vmax.f32 %v2166_v8, 0.0 }
 0x1f8   :  { %v2172_v10 = vpack.c.bf16 %v2171_v9, %v2171_v9 }
 0x1fa   :  { %3066 = vmatmul.mubr.bf16.vlgmr.msra.gmra.mrb[24].mxu0 %v2172_v10 }
 0x1fb   :  { %3105 = vmatprep.mubr.msk.bf16.mxu0 %vm3487_vm0, %v3486_v62  ;;  %3090 = vmatpush3.bf16.msra.mxu0 %v3327_v13 }
 0x1fc   :  { %3091 = vmatprep.subr.bf16.mxu0 %v3486_v62 }
 0x1ff   :  { %3092 = vmatpush3.bf16.msra.mxu0 %v3328_v14 }
 0x200   :  { %3093 = vmatprep.subr.bf16.mxu0 %v3486_v62 }
 0x203   :  { %3094 = vmatpush3.bf16.msra.mxu0 %v3329_v15 }
 0x204   :  { %3095 = vmatprep.subr.bf16.mxu0 %v3486_v62 }
 0x207   :  { %3096 = vmatpush3.bf16.msra.mxu0 %v3330_v16 }
 0x208   :  { %3097 = vmatprep.subr.bf16.mxu0 %v3486_v62 }
 0x20b   :  { %3098 = vmatpush3.bf16.msra.mxu0 %v3331_v17 }
 0x20c   :  { %3099 = vmatprep.subr.bf16.mxu0 %v3486_v62 }
 0x20f   :  { %3100 = vmatpush3.bf16.msra.mxu0 %v3332_v18 }
 0x210   :  { %3101 = vmatprep.subr.bf16.mxu0 %v3486_v62 }
 0x213   :  { %3102 = vmatpush3.bf16.msra.mxu0 %v3333_v27 }
 0x214   :  { %3103 = vmatprep.subr.bf16.mxu0 %v3486_v62 }
 0x217   :  { %3104 = vmatpush3.bf16.msra.mxu0 %v3334_v28 }
 0x2cd   :  { %v2278_v20 = vpop.f32.mrb[24].mxu0 }
 0x2ce   :  { %v2279_v21 = vadd.f32 %v2731_v19, %v2278_v20  ;;  %v3067_v22 = vpop.f32.mrb[25].mxu0 }
 0x2cf   :  { %v2281_v23 = vpop.f32.mrb[26].mxu0 }
 0x2d0   :  { %v2284_v24 = vmax.f32 %v2279_v21, 0.0  ;;  %v3068_v25 = vpop.f32.mrb[27].mxu0 }
 0x2d2   :  { %v2285_v26 = vpack.c.bf16 %v2284_v24, %v2284_v24 }
 0x2d4   :  { %3086 = vmatmul.mubr.bf16.vlgmr.msra.gmra.mrb[24].mxu1 %v2285_v26 }
 0x3a7   :  { %v2391_v30 = vpop.f32.mrb[24].mxu1 }
 0x3a8   :  { %v2392_v31 = vadd.f32 %v2740_v29, %v2391_v30  ;;  %v3087_v32 = vpop.f32.mrb[25].mxu1 }
 0x3a9   :  { %v2394_v33 = vpop.f32.mrb[26].mxu1 }
 0x3aa   :  { %v2397_v34 = vmax.f32 %v2392_v31, 0.0  ;;  %v3088_v35 = vpop.f32.mrb[27].mxu1 }
 0x3ac   :  { %v2398_v36 = vpack.c.bf16 %v2397_v34, %v2397_v34 }
 0x3ae   :  { %3106 = vmatmul.mubr.bf16.vlgmr.msra.gmra.mrb[28].mxu0 %v2398_v36 }
 0x481   :  { %v2504_v38 = vpop.f32.mrb[28].mxu0 }
 0x482   :  { %v2505_v62 = vadd.f32 %v2749_v37, %v2504_v38  ;;  %v3107_v39 = vpop.f32.mrb[29].mxu0 }
 0x483   :  { %v2507_v40 = vpop.f32.mrb[30].mxu0 }
 0x484   :  { %2510 = vmax.xlane.f32.xlu0 %v2505_v62  ;;  %v3108_v41 = vpop.f32.mrb[31].mxu0 }
 0x511   :  { %v2511_v42 = vpop.xlane.xlu0 %2510 }
 0x512   :  { %v2512_v43 = vsub.f32 %v2505_v62, %v2511_v42 }
 0x514   :  { %v2513_v44 = vmul.f32 1.442695, %v2512_v43 }
 0x516   :  { %3335 = vpow2.f32 %v2513_v44 }
 0x520   :  { %v3336_v45 = vpop.eup %3335 }
 0x521   :  { %2515 = vadd.xlane.f32.xlu0 %v3336_v45 }
 0x5ae   :  { %v2516_v46 = vpop.xlane.xlu0 %2515 }
 0x5af   :  { %3337 = vrcp.f32 %v2516_v46 }
 0x5b9   :  { %v3338_v47 = vpop.eup %3337 }
 0x5ba   :  { %v2518_v48 = vmul.f32 %v3338_v47, %v3336_v45 }
 0x5bc   :  { %v2519_v49 = vpack.c.bf16 %v2518_v48, %v2518_v48 }
 0x5be   :  { %2520 = vst [vmem:[#allocation11] sm:$0xf] %v2519_v49 }
 0x5bf   :  { %3460 = shalt.err (!%p3457_p2)
}
 0x5c0   :  { %s3461_s1 = scalar_lea.hbm %s3674_s9, 64 }
 0x5c1   :  { %p3462_p3 = scmp.ne.s32.totalorder %s3674_s9, %s3461_s1  ;;  %p3465_p4 = scmp.lt.u32.totalorder %s3461_s1, %s3674_s9 }
 0x5c3   :  { %p3467_p5 = pnand %p3465_p4, %p3462_p3 }
 0x5c5   :  { %3470 = shalt.err (!%p3467_p5)
}
 0x5c6   :  { %2530 = dma.vmem_to_hbm [thread:$0]  %s2528_s11, 64, %s3674_s9, [#allocation4]  }
 0x5c7   :  { %3477 = dma.done.wait [#allocation4], 64  }
 0x5c8   :  { %3478 = vsyncadd [#allocation4], 4294967232 }
 0x5c9   :  { %2534 = vsyncpa [#allocation3], 1 }
 0x5ca   :  { %2535 = vsyncpa [#allocation6], 1 }
 0x5cb   :  { %2536 = vsyncpa [#allocation9], 1 }
 0x5cc   :  { %2537 = vsyncpa [#allocation4], 1 }

</bundles_post_ra>
